<compile_context>
chip_gen: v7x
topology: tpu7x:2x2x1
jax: 0.10.0
libtpu: 0.0.40
codegen_flags: <defaults>
</compile_context>

<pallas_src>
import functools

import jax
import jax.numpy as jnp
from jax.experimental import pallas as pl
from jax.experimental.pallas import tpu as pltpu

BN_EPS = 1e-5


# ---------------------------------------------------------------------------
# Kernel
# ---------------------------------------------------------------------------
def _head_kernel(x_ref, wconv_ref, bias_ref, fcw_ref, fcb_ref, out_ref,
                 pooled_ref):
    # x_ref:      (Bn, C, HW)  f32   one scale, one batch block (NCHW layout)
    # wconv_ref:  (C2, C)      bf16  1x1 conv weight with BN scale folded in
    # bias_ref:   (C2, 1)      f32   folded BN bias
    # fcw_ref:    (C2, Kp)     f32   fc weight^T * (scale_weight[s] / HW), K padded
    # fcb_ref:    (1, Kp)      f32   fc bias (padded)
    # out_ref:    (Bn, Kp)     f32   logits, resident across the scale axis
    # pooled_ref: (Bn, C2)     f32   VMEM scratch for pooled features
    s = pl.program_id(1)

    # NOTE: the accumulate-over-scales below is only correct because the scale
    # axis is the *innermost* ("arbitrary") grid axis and the out BlockSpec
    # revisits the same (nb, 0) block for every s.  Do not reorder the grid.
    @pl.when(s == 0)
    def _init():
        out_ref[...] = jnp.broadcast_to(fcb_ref[...], out_ref.shape)

    bn, c2 = pooled_ref.shape
    hw = x_ref.shape[-1]
    w = wconv_ref[...]                                        # (C2, C) bf16
    # Hoisted out of the per-sample loop (JAX does not CSE broadcast_in_dim).
    bias_b = jnp.broadcast_to(bias_ref[...], (c2, hw))        # (C2, HW) f32

    def pooled_row(xb):
        # xb: (C, HW) f32 -> pooled (1, C2) f32 (sum over HW; 1/HW is in fcw).
        zb = jnp.dot(w, xb.astype(jnp.bfloat16),
                     preferred_element_type=jnp.float32)       # (C2, HW) MXU
        zb = jnp.maximum(zb + bias_b, 0.0)                     # BN bias + ReLU
        return jnp.sum(zb, axis=-1).reshape(1, -1)

    if bn <= 8:
        # Small batch block: static unroll; rows written straight to scratch.
        for i in range(bn):
            pooled_ref[pl.ds(i, 1), :] = pooled_row(x_ref[i])
    else:
        # Larger blocks: rolled loop -> bounded live ranges (one (C2,HW) temp)
        # and a visible loop for the scheduler.
        def body(i, carry):
            pooled_ref[pl.ds(i, 1), :] = pooled_row(x_ref[i])
            return carry
        jax.lax.fori_loop(0, bn, body, 0)

    # Fused Linear.  fcw already carries the avg-pool 1/HW and the per-scale
    # mixing weight, so this accumulation doubles as the weighted scale sum.
    out_ref[...] += jnp.dot(pooled_ref[...], fcw_ref[...],
                            preferred_element_type=jnp.float32)
    # Dropout(p) is identity at inference; nothing to do here.


# ---------------------------------------------------------------------------
# Pallas wrapper
# ---------------------------------------------------------------------------
def _head_pallas(xs, scale_w, params):
    """xs: (S, N, C, H, W) f32, scale_w: (S,) f32.  Returns (N, num_classes)."""
    S, N, C, H, W = xs.shape
    HW = H * W
    C2 = 2 * C

    # Fold eval-mode BN into the conv weight / bias.
    bn_scale = params["bn_gamma"] / jnp.sqrt(params["bn_var"] + BN_EPS)      # (C2,)
    bias = (params["bn_beta"] - params["bn_mean"] * bn_scale)
    bias = bias.reshape(C2, 1).astype(jnp.float32)
    wconv = (params["conv_w"].reshape(C2, C) * bn_scale[:, None]).astype(jnp.bfloat16)

    # Fold avg-pool 1/HW and the per-scale mixing weight into per-scale fc
    # weights; pad num_classes up to a lane-dense multiple of 128.
    fcw = params["fc_w"].T.astype(jnp.float32)                               # (C2, K)
    K = fcw.shape[1]
    Kp = ((K + 127) // 128) * 128
    fcb = params["fc_b"].astype(jnp.float32)
    if Kp != K:
        fcw = jnp.pad(fcw, ((0, 0), (0, Kp - K)))
        fcb = jnp.pad(fcb, (0, Kp - K))
    mix = scale_w.astype(jnp.float32) * (1.0 / HW)                           # (S,)
    fcw_s = mix[:, None, None] * fcw[None, :, :]                             # (S, C2, Kp)
    fcb = fcb.reshape(1, Kp)

    # Batch block: as large as a per-buffer VMEM budget allows (up to 64).
    x_bytes_per_sample = C * HW * 4                                          # f32 in VMEM
    x_budget = 6 * 1024 * 1024                                               # per pipeline buffer
    Bn = int(min(N, 64, max(1, x_budget // x_bytes_per_sample)))
    if Bn < N:
        # Blocked along batch: the (Bn, Kp) out tile needs Bn % 8 == 0.
        Bn = max(8, (Bn // 8) * 8)
        if Bn >= N:
            Bn = N
    n_blocks = (N + Bn - 1) // Bn
    Npad = n_blocks * Bn

    # (S, N, C, H, W) -> (S, N, C, HW) is a free reshape; x stays f32 in HBM
    # (no dtype-convert / transpose pass) and is cast to bf16 inside the kernel.
    x = xs.reshape(S, N, C, HW)
    if Npad != N:
        x = jnp.pad(x, ((0, 0), (0, Npad - N), (0, 0), (0, 0)))

    # VMEM budget with headroom; capped at 48 MiB so it also fits v7x (64 MiB).
    est = (2 * Bn * C * HW * 4                      # x block, double buffered (f32)
           + 2 * (C2 * C * 2 + C2 * 128 * 4 + C2 * Kp * 4 + 8 * Kp * 4)
           + 2 * Bn * Kp * 4                        # out block, double buffered
           + Bn * C2 * 4                            # pooled scratch
           + 2 * C2 * HW * 4 + C * HW * 2)          # in-kernel temporaries
    vmem_limit = int(min(48 * 1024 * 1024, max(32 * 1024 * 1024, 2 * est)))

    # TODO(synk): for C*HW so large that even Bn=1 blows the budget, add an
    #   HW-chunk "arbitrary" grid axis (with lane masking of the padded tail)
    #   accumulating partial pooled sums; not needed for typical head inputs.
    # TODO(synk): on v7x with n_blocks == 1 the second TensorCore idles; a
    #   parallel HW/scale split with a final partial-logit reduce would use it.
    # TODO(synk): optional int8 x/wconv path for v5e/v6e (not portable to v7x).
    out = pl.pallas_call(
        _head_kernel,
        out_shape=jax.ShapeDtypeStruct((Npad, Kp), jnp.float32),
        grid=(n_blocks, S),                         # S innermost: see kernel NOTE
        in_specs=[
            pl.BlockSpec((None, Bn, C, HW), lambda nb, s: (s, nb, 0, 0)),
            pl.BlockSpec((C2, C), lambda nb, s: (0, 0)),
            pl.BlockSpec((C2, 1), lambda nb, s: (0, 0)),
            pl.BlockSpec((None, C2, Kp), lambda nb, s: (s, 0, 0)),
            pl.BlockSpec((1, Kp), lambda nb, s: (0, 0)),
        ],
        out_specs=pl.BlockSpec((Bn, Kp), lambda nb, s: (nb, 0)),
        scratch_shapes=[pltpu.VMEM((Bn, C2), jnp.float32)],
        compiler_params=pltpu.CompilerParams(
            dimension_semantics=("parallel", "arbitrary"),
            vmem_limit_bytes=vmem_limit,
        ),
    )(x, wconv, bias, fcw_s, fcb)
    return out[:N, :K]


@functools.partial(jax.jit, static_argnames=("is_aux",))
def mgnn_head_forward(x, params, is_aux=True):
    """Forward pass of MGNNHead (inference semantics).

    is_aux=True : x is a single (N, C, H, W) tensor.
    is_aux=False: x is a sequence of 4 (N, C, H, W) tensors; per-scale pooled
                  features are mixed with the L2-normalized learnable 4-vector.
    """
    if is_aux:
        xs = jnp.asarray(x)[None]                            # (1, N, C, H, W)
        sw = jnp.ones((1,), jnp.float32)
    else:
        xs = jnp.stack(list(x), axis=0)                      # (S, N, C, H, W)
        w = params["stack_w"]
        sw = w / jnp.maximum(jnp.linalg.norm(w), 1e-12)      # F.normalize(p=2)
    return _head_pallas(xs, sw, params)


# ---------------------------------------------------------------------------
# Deterministic parameter construction (mirrors MGNNHead.__init__/init_weights)
# ---------------------------------------------------------------------------
def make_params(key, in_channels, num_classes):
    C, C2 = in_channels, 2 * in_channels
    k_conv, k_fc = jax.random.split(key, 2)
    # xavier_init(distribution='uniform') on Conv2d(C, 2C, 1, bias=False)
    fan_in, fan_out = C, C2
    bound = jnp.sqrt(6.0 / (fan_in + fan_out))
    conv_w = jax.random.uniform(k_conv, (C2, C, 1, 1), jnp.float32, -bound, bound)
    # constant_init(BN2d, 1): gamma=1, beta=0; fresh running stats: mean=0, var=1
    return {
        "conv_w": conv_w,
        "bn_gamma": jnp.ones((C2,), jnp.float32),
        "bn_beta": jnp.zeros((C2,), jnp.float32),
        "bn_mean": jnp.zeros((C2,), jnp.float32),
        "bn_var": jnp.ones((C2,), jnp.float32),
        # normal_init(Linear, std=0.01), bias=0
        "fc_w": 0.01 * jax.random.normal(k_fc, (num_classes, C2), jnp.float32),
        "fc_b": jnp.zeros((num_classes,), jnp.float32),
        # nn.Parameter(torch.ones(4)) for the not-is_aux branch
        "stack_w": jnp.ones((4,), jnp.float32),
    }


# ---------------------------------------------------------------------------
# Pure-JAX reference (for correctness check)
# ---------------------------------------------------------------------------
def _ref_pool(x_nchw, params):
    wc = params["conv_w"].reshape(params["conv_w"].shape[0], -1)      # (2C, C)
    z = jnp.einsum("nchw,dc->ndhw", x_nchw, wc)
    scale = params["bn_gamma"] / jnp.sqrt(params["bn_var"] + BN_EPS)
    bias = params["bn_beta"] - params["bn_mean"] * scale
    z = z * scale[None, :, None, None] + bias[None, :, None, None]
    z = jnp.maximum(z, 0.0)
    return z.mean(axis=(2, 3))


def _ref_forward(x, params, is_aux=True):
    if is_aux:
        return _ref_pool(x, params) @ params["fc_w"].T + params["fc_b"]
    pooled = jnp.stack([_ref_pool(xi, params) for xi in x], axis=0)
    w = params["stack_w"] / jnp.maximum(jnp.linalg.norm(params["stack_w"]), 1e-12)
    feat = jnp.einsum("sbc,s->bc", pooled, w)
    return feat @ params["fc_w"].T + params["fc_b"]


# TODO(synk): training-time pieces (Dropout sampling, loss(), predict()) are
# framework glue and intentionally not reproduced; dropout is inference identity.

if __name__ == "__main__":
    key = jax.random.PRNGKey(0)
    k_x, k_p, k_stack = jax.random.split(key, 3)

    N, C, H, W = 2, 4, 16, 16
    num_classes = 6

    params = make_params(k_p, C, num_classes)
    x = jax.random.normal(k_x, (N, C, H, W), jnp.float32)

    # is_aux=True (default) path
    out_aux = jax.block_until_ready(mgnn_head_forward(x, params, is_aux=True))
    ref_aux = _ref_forward(x, params, is_aux=True)
    assert out_aux.shape == (N, num_classes)
    assert jnp.allclose(out_aux, ref_aux, atol=2e-3, rtol=2e-2), (
        float(jnp.max(jnp.abs(out_aux - ref_aux))))

    # is_aux=False path (list of 4 feature maps)
    xs = list(jax.random.normal(k_stack, (4, N, C, H, W), jnp.float32))
    out_multi = jax.block_until_ready(mgnn_head_forward(xs, params, is_aux=False))
    ref_multi = _ref_forward(xs, params, is_aux=False)
    assert out_multi.shape == (N, num_classes)
    assert jnp.allclose(out_multi, ref_multi, atol=2e-3, rtol=2e-2), (
        float(jnp.max(jnp.abs(out_multi - ref_multi))))

    print("KERNEL_OK")
</pallas_src>

<mosaic_0001>
module attributes {stable_mosaic.version = 11 : i64} {
  func.func @_head_kernel(%arg0: i32, %arg1: i32, %arg2: memref<1x2x4x256xf32, #tpu.memory_space<vmem>>, %arg3: memref<8x4xbf16, #tpu.memory_space<vmem>>, %arg4: memref<8x1xf32, #tpu.memory_space<vmem>>, %arg5: memref<1x8x128xf32, #tpu.memory_space<vmem>>, %arg6: memref<1x128xf32, #tpu.memory_space<vmem>>, %arg7: memref<2x128xf32, #tpu.memory_space<vmem>>, %arg8: memref<2x8xf32, #tpu.memory_space<vmem>>) attributes {dimension_semantics = [#tpu.dimension_semantics<parallel>, #tpu.dimension_semantics<arbitrary>], iteration_bounds = array<i64: 1, 1>, scalar_prefetch = 0 : i64, scratch_operands = 1 : i64, tpu.core_type = #tpu.core_type<tc>, window_params = [{transform_indices = @transform_0, window_bounds = array<i64: 1, 2, 4, 256>}, {pipeline_mode = #tpu.pipeline_mode<synchronous>, transform_indices = @transform_1, window_bounds = array<i64: 8, 4>}, {pipeline_mode = #tpu.pipeline_mode<synchronous>, transform_indices = @transform_2, window_bounds = array<i64: 8, 1>}, {transform_indices = @transform_3, window_bounds = array<i64: 1, 8, 128>}, {pipeline_mode = #tpu.pipeline_mode<synchronous>, transform_indices = @transform_4, window_bounds = array<i64: 1, 128>}, {transform_indices = @transform_5, window_bounds = array<i64: 2, 128>}]} {
    %c0_i32 = arith.constant 0 : i32
    %0 = arith.cmpi eq, %arg1, %c0_i32 : i32
    %1 = arith.extui %0 : i1 to i32
    %c0_i32_0 = arith.constant 0 : i32
    %2 = arith.cmpi ne, %1, %c0_i32_0 : i32
    scf.if %2 {
      %c0_30 = arith.constant 0 : index
      %c0_31 = arith.constant 0 : index
      %34 = vector.load %arg6[%c0_30, %c0_31] : memref<1x128xf32, #tpu.memory_space<vmem>>, vector<1x128xf32>
      %35 = vector.shape_cast %34 : vector<1x128xf32> to vector<1x128xf32>
      %36 = vector.broadcast %35 : vector<1x128xf32> to vector<2x128xf32>
      %c0_32 = arith.constant 0 : index
      %c0_33 = arith.constant 0 : index
      %37 = vector.load %arg7[%c0_32, %c0_33] : memref<2x128xf32, #tpu.memory_space<vmem>>, vector<2x128xf32>
      tpu.vector_store %arg7[%c0_32, %c0_33], %36 {strides = array<i32>} : memref<2x128xf32, #tpu.memory_space<vmem>>, vector<2x128xf32>,
    } else {
    }
    %c0 = arith.constant 0 : index
    %c0_1 = arith.constant 0 : index
    %3 = vector.load %arg3[%c0, %c0_1] : memref<8x4xbf16, #tpu.memory_space<vmem>>, vector<8x4xbf16>
    %c0_2 = arith.constant 0 : index
    %c0_3 = arith.constant 0 : index
    %4 = vector.load %arg4[%c0_2, %c0_3] : memref<8x1xf32, #tpu.memory_space<vmem>>, vector<8x1xf32>
    %5 = vector.shape_cast %4 : vector<8x1xf32> to vector<8x1xf32>
    %6 = vector.broadcast %5 : vector<8x1xf32> to vector<8x256xf32>
    %c0_4 = arith.constant 0 : index
    %c0_5 = arith.constant 0 : index
    %c0_6 = arith.constant 0 : index
    %c0_7 = arith.constant 0 : index
    %7 = vector.load %arg2[%c0_4, %c0_5, %c0_6, %c0_7] : memref<1x2x4x256xf32, #tpu.memory_space<vmem>>, vector<1x1x4x256xf32>
    %8 = vector.shape_cast %7 : vector<1x1x4x256xf32> to vector<4x256xf32>
    %9 = arith.truncf %8 : vector<4x256xf32> to vector<4x256xbf16>
    %cst = arith.constant dense<0.000000e+00> : vector<8x256xf32>
    %10 = tpu.matmul %3, %9, %cst {dimension_numbers = #tpu.dot_dimension_numbers<[1], [0], [0], [1], [0, 0, 1, 1], [], []>} : vector<8x4xbf16>, vector<4x256xbf16>, vector<8x256xf32> -> vector<8x256xf32>
    %11 = arith.addf %10, %6 : vector<8x256xf32>
    %cst_8 = arith.constant 0.000000e+00 : f32
    %12 = vector.broadcast %cst_8 : f32 to vector<8x256xf32>
    %13 = arith.maximumf %11, %12 : vector<8x256xf32>
    %cst_9 = arith.constant dense<0.000000e+00> : vector<8xf32>
    %14 = vector.multi_reduction <add>, %13, %cst_9 [1] : vector<8x256xf32> to vector<8xf32>
    %15 = vector.shape_cast %14 : vector<8xf32> to vector<1x8xf32>
    %c0_10 = arith.constant 0 : index
    %c0_11 = arith.constant 0 : index
    %16 = vector.load %arg8[%c0_10, %c0_11] : memref<2x8xf32, #tpu.memory_space<vmem>>, vector<1x8xf32>
    tpu.vector_store %arg8[%c0_10, %c0_11], %15 {strides = array<i32>} : memref<2x8xf32, #tpu.memory_space<vmem>>, vector<1x8xf32>,
    %c0_12 = arith.constant 0 : index
    %c1 = arith.constant 1 : index
    %c0_13 = arith.constant 0 : index
    %c0_14 = arith.constant 0 : index
    %17 = vector.load %arg2[%c0_12, %c1, %c0_13, %c0_14] : memref<1x2x4x256xf32, #tpu.memory_space<vmem>>, vector<1x1x4x256xf32>
    %18 = vector.shape_cast %17 : vector<1x1x4x256xf32> to vector<4x256xf32>
    %19 = arith.truncf %18 : vector<4x256xf32> to vector<4x256xbf16>
    %cst_15 = arith.constant dense<0.000000e+00> : vector<8x256xf32>
    %20 = tpu.matmul %3, %19, %cst_15 {dimension_numbers = #tpu.dot_dimension_numbers<[1], [0], [0], [1], [0, 0, 1, 1], [], []>} : vector<8x4xbf16>, vector<4x256xbf16>, vector<8x256xf32> -> vector<8x256xf32>
    %21 = arith.addf %20, %6 : vector<8x256xf32>
    %cst_16 = arith.constant 0.000000e+00 : f32
    %22 = vector.broadcast %cst_16 : f32 to vector<8x256xf32>
    %23 = arith.maximumf %21, %22 : vector<8x256xf32>
    %cst_17 = arith.constant dense<0.000000e+00> : vector<8xf32>
    %24 = vector.multi_reduction <add>, %23, %cst_17 [1] : vector<8x256xf32> to vector<8xf32>
    %25 = vector.shape_cast %24 : vector<8xf32> to vector<1x8xf32>
    %c1_18 = arith.constant 1 : index
    %c0_19 = arith.constant 0 : index
    %26 = vector.load %arg8[%c1_18, %c0_19] : memref<2x8xf32, #tpu.memory_space<vmem>>, vector<1x8xf32>
    tpu.vector_store %arg8[%c1_18, %c0_19], %25 {strides = array<i32>} : memref<2x8xf32, #tpu.memory_space<vmem>>, vector<1x8xf32>,
    %c0_20 = arith.constant 0 : index
    %c0_21 = arith.constant 0 : index
    %27 = vector.load %arg7[%c0_20, %c0_21] : memref<2x128xf32, #tpu.memory_space<vmem>>, vector<2x128xf32>
    %c0_22 = arith.constant 0 : index
    %c0_23 = arith.constant 0 : index
    %28 = vector.load %arg8[%c0_22, %c0_23] : memref<2x8xf32, #tpu.memory_space<vmem>>, vector<2x8xf32>
    %c0_24 = arith.constant 0 : index
    %c0_25 = arith.constant 0 : index
    %c0_26 = arith.constant 0 : index
    %29 = vector.load %arg5[%c0_24, %c0_25, %c0_26] : memref<1x8x128xf32, #tpu.memory_space<vmem>>, vector<1x8x128xf32>
    %30 = vector.shape_cast %29 : vector<1x8x128xf32> to vector<8x128xf32>
    %cst_27 = arith.constant dense<0.000000e+00> : vector<2x128xf32>
    %31 = tpu.matmul %28, %30, %cst_27 {dimension_numbers = #tpu.dot_dimension_numbers<[1], [0], [0], [1], [0, 0, 1, 1], [], []>} : vector<2x8xf32>, vector<8x128xf32>, vector<2x128xf32> -> vector<2x128xf32>
    %32 = arith.addf %27, %31 : vector<2x128xf32>
    %c0_28 = arith.constant 0 : index
    %c0_29 = arith.constant 0 : index
    %33 = vector.load %arg7[%c0_28, %c0_29] : memref<2x128xf32, #tpu.memory_space<vmem>>, vector<2x128xf32>
    tpu.vector_store %arg7[%c0_28, %c0_29], %32 {strides = array<i32>} : memref<2x128xf32, #tpu.memory_space<vmem>>, vector<2x128xf32>,
    return
  }
  func.func @transform_0(%arg0: i32, %arg1: i32) -> (i32, i32, i32, i32) {
    %c0_i32 = arith.constant 0 : i32
    %c0_i32_0 = arith.constant 0 : i32
    %c0_i32_1 = arith.constant 0 : i32
    return %arg1, %arg0, %c0_i32, %c0_i32_0 : i32, i32, i32, i32
  }
  func.func @transform_1(%arg0: i32, %arg1: i32) -> (i32, i32) {
    %c0_i32 = arith.constant 0 : i32
    %c0_i32_0 = arith.constant 0 : i32
    %c0_i32_1 = arith.constant 0 : i32
    return %c0_i32, %c0_i32_0 : i32, i32
  }
  func.func @transform_2(%arg0: i32, %arg1: i32) -> (i32, i32) {
    %c0_i32 = arith.constant 0 : i32
    %c0_i32_0 = arith.constant 0 : i32
    %c0_i32_1 = arith.constant 0 : i32
    return %c0_i32, %c0_i32_0 : i32, i32
  }
  func.func @transform_3(%arg0: i32, %arg1: i32) -> (i32, i32, i32) {
    %c0_i32 = arith.constant 0 : i32
    %c0_i32_0 = arith.constant 0 : i32
    %c0_i32_1 = arith.constant 0 : i32
    return %arg1, %c0_i32, %c0_i32_0 : i32, i32, i32
  }
  func.func @transform_4(%arg0: i32, %arg1: i32) -> (i32, i32) {
    %c0_i32 = arith.constant 0 : i32
    %c0_i32_0 = arith.constant 0 : i32
    %c0_i32_1 = arith.constant 0 : i32
    return %c0_i32, %c0_i32_0 : i32, i32
  }
  func.func @transform_5(%arg0: i32, %arg1: i32) -> (i32, i32) {
    %c0_i32 = arith.constant 0 : i32
    %c0_i32_0 = arith.constant 0 : i32
    return %arg0, %c0_i32 : i32, i32
  }
}

</mosaic_0001>

<bundles_post_ra>
// kernel: mgnn_head_forward.1
= control target key start
LH: loop header
LB: loop body
LE: loop exit
PB: predicated region body
PF: predicated region fallthrough
CT: control target
= control target key end

     0   :  { %vm51_vm0 = vcmask 1041408   ;;  %v318_v6 = vmov 0   ;;  %s386_s0 = inlined_call_operand.vmem [shape: f32[1,2,4,256], index: 0, kind: input, shape index: {}]   ;;  %s387_s1 = inlined_call_operand.vmem [shape: bf16[8,4], index: 1, kind: input, shape index: {}]   ;;  %s388_s2 = inlined_call_operand.vmem [shape: f32[8,1], index: 2, kind: input, shape index: {}]   ;;  %s389_s3 = inlined_call_operand.vmem [shape: f32[1,8,128], index: 3, kind: input, shape index: {}]   ;;  %s390_s4 = inlined_call_operand.vmem [shape: f32[1,128], index: 4, kind: input, shape index: {}]   ;;  %s391_s5 = inlined_call_operand.hbm [shape: f32[2,128], index: 5, kind: output, shape index: {}]  }
   0x1   :  { %v41_v0 = vld [vmem:[%s386_s0] sm:$0xff]  ;;  %v276_v1 = vld [vmem:[%s386_s0 + $0x8] sm:$0xff]  ;;  %90 = vmatprep.mubr.bf16.mxu0 %v318_v6 }
   0x2   :  { %v43_v2 = vcombine.high %v41_v0, %v41_v0  ;;  %v117_v3 = vcombine.high %v276_v1, %v276_v1  ;;  %v45_v4 = vpack.c.bf16 %v41_v0, %v41_v0  ;;  %v119_v5 = vpack.c.bf16 %v276_v1, %v276_v1  ;;  %v35_v7 = vld [vmem:[%s388_s2] sm:$0xff] }
   0x3   :  { %10 = vsyncpa [#allocation4], 0  ;;  %159 = vmatprep.mubr.bf16.mxu1 %v318_v6  ;;  %291 = vset.pattern.permute.xlu0 %v318_v6  ;;  %v34_v12 = vld [vmem:[%s387_s1] sm:$0xf]  ;;  %vm47_vm1 = vcmask 31744   ;;  %v319_v33 = vmov 0.0   ;;  %v105_v35 = vlaneseq }
   0x4   :  { %v46_v8 = vpack.c.bf16 %v43_v2, %v43_v2  ;;  %v120_v9 = vpack.c.bf16 %v117_v3, %v117_v3  ;;  %v53_v10 = vsel %vm51_vm0, %v45_v4, 0  ;;  %v122_v11 = vsel %vm51_vm0, %v119_v5, 0  ;;  %38 = vperm.xlu0 %291, %v35_v7   ;;  %v182_v32 = vld [vmem:[%s389_s3] sm:$0xff]  ;;  %s321_s3 = smov [#allocation3]  }
   0x5   :  { %vm320_vm2 = vmmov 0   ;;  %v273_v34 = vld [vmem:[%s390_s4] ss:$0 sm:$0xff]  ;;  %v106_v36 = vand.u32 127, %v105_v35  ;;  %v108_v37 = vshrl.u32 %v105_v35, 7  ;;  %vm112_vm3 = vcmask 57344  }
   0x6   :  { %274 = vmatprep.subr.msk.bf16.mxu0 %vm51_vm0, %v46_v8  ;;  %277 = vmatprep.subr.msk.bf16.mxu1 %vm51_vm0, %v120_v9  ;;  %33 = vst [vmem:[#allocation3] sm:$0x3] %v273_v34  ;;  %vm183_vm4 = vcmask 64512   ;;  %s265_s27 = sshll.u32 %s321_s3, 4  ;;  %s266_s27 = int_to_ptr.vmem [resolvable:$true] %s265_s27 }
   0x7   :  { %59 = vmatpush1.bf16.msra.mxu0 %v53_v10  ;;  %128 = vmatpush1.bf16.msra.mxu1 %v122_v11  ;;  %v109_v38 = vsub.s32 %v106_v36, %v108_v37  ;;  %s294_s4 = scalar_lea.vmem %s266_s27, 32  ;;  %p299_p1 = scmp.lt.s32.totalorder %s266_s27, %s266_s27 }
   0x8   :  { %282 = vmatprep.subr.mxu0 %v319_v33  ;;  %p295_p0 = scmp.ne.s32.totalorder %s266_s27, %s294_s4  ;;  %p300_p2 = scmp.lt.s32.totalorder %s294_s4, %s294_s4 }
   0xa   :  { %275 = vmatmul.mubr.msk.bf16.vlgmr.msra.gmra.mrb[0].mxu0 %vm47_vm1, %v34_v12  ;;  %278 = vmatmul.mubr.msk.bf16.vlgmr.msra.gmra.mrb[0].mxu1 %vm47_vm1, %v34_v12  ;;  %p301_p3 = por %p300_p2, %p299_p1 }
   0xb   :  { %284 = vmatprep.mubr.msk.f32.mxu0 %vm320_vm2, %v319_v33  ;;  %283 = vmatpush3.msra.mxu0 %v182_v32 }
   0xc   :  { %p302_p4 = pnand %p301_p3, %p295_p0 }
   0xd   :  { %v180_v44 = vld [vmem:[#allocation3] sm:$0x3] }
  0x83   :  { %v39_v13 = vpop.permute.xlu0 %38 }
  0xdd   :  { %v92_v14 = vpop.f32.mrb[0].mxu0  ;;  %v161_v15 = vpop.f32.mrb[0].mxu1 }
  0xde   :  { %v93_v16 = vadd.f32 %v92_v14, %v39_v13  ;;  %v162_v17 = vadd.f32 %v161_v15, %v39_v13  ;;  %v94_v18 = vpop.f32.mrb[1].mxu0  ;;  %v163_v19 = vpop.f32.mrb[1].mxu1 }
  0xdf   :  { %v95_v20 = vadd.f32 %v94_v18, %v39_v13  ;;  %v164_v21 = vadd.f32 %v163_v19, %v39_v13  ;;  %v96_v22 = vpop.f32.mrb[2].mxu0  ;;  %v165_v23 = vpop.f32.mrb[2].mxu1 }
  0xe0   :  { %v99_v24 = vmax.f32 %v93_v16, 0.0  ;;  %v168_v25 = vmax.f32 %v162_v17, 0.0  ;;  %v97_v26 = vpop.f32.mrb[3].mxu0  ;;  %v166_v27 = vpop.f32.mrb[3].mxu1 }
  0xe1   :  { %v100_v28 = vmax.f32 %v95_v20, 0.0  ;;  %v169_v29 = vmax.f32 %v164_v21, 0.0 }
  0xe3   :  { %v170_v30 = vadd.f32 %v169_v29, %v168_v25  ;;  %v101_v31 = vadd.f32 %v100_v28, %v99_v24 }
  0xe5   :  { %171 = vadd.xlane.f32.xlu1 %v170_v30  ;;  %102 = vadd.xlane.f32.xlu0 %v101_v31 }
 0x172   :  { %v172_v39 = vpop.xlane.xlu1 %171  ;;  %v103_v40 = vpop.xlane.xlu0 %102 }
 0x173   :  { %v177_v41 = vrot.slane %v172_v39, %v109_v38  ;;  %v110_v42 = vrot.slane %v103_v40, %v109_v38 }
 0x175   :  { %179 = vst.msk [vmem:[#allocation2 + $0x1] sm:$0x1] %vm112_vm3, %v177_v41  ;;  %113 = vst.msk [vmem:[#allocation2] sm:$0x1] %vm112_vm3, %v110_v42 }
 0x17c   :  { %v181_v43 = vld [vmem:[#allocation2] sm:$0x3] }
 0x17d   :  { %285 = vmatmul.mubr.msk.f32.vlgmr.msra.gmra.mrb[4].mxu0 %vm183_vm4, %v181_v43 }
 0x250   :  { %v253_v45 = vpop.f32.mrb[4].mxu0 }
 0x251   :  { %v257_v46 = vadd.f32 %v253_v45, %v180_v44  ;;  %v286_v47 = vpop.f32.mrb[5].mxu0 }
 0x253   :  { %258 = vst [vmem:[#allocation3] sm:$0x3] %v257_v46 }
 0x254   :  { %305 = shalt.err (!%p302_p4)
}
 0x255   :  { %s306_s30 = scalar_lea.hbm %s391_s5, 32 }
 0x256   :  { %p307_p5 = scmp.ne.s32.totalorder %s391_s5, %s306_s30  ;;  %p310_p6 = scmp.lt.u32.totalorder %s306_s30, %s391_s5 }
 0x258   :  { %p312_p7 = pnand %p310_p6, %p307_p5 }
 0x25a   :  { %315 = shalt.err (!%p312_p7)
}
 0x25b   :  { %268 = dma.vmem_to_hbm [thread:$0]  %s266_s27, 32, %s391_s5, [#allocation4]  }
 0x25c   :  { %316 = dma.done.wait [#allocation4], 32  }
 0x25d   :  { %317 = vsyncadd [#allocation4], 4294967264 }
 0x25e   :  { %272 = vsyncpa [#allocation4], 1 }

</bundles_post_ra>
